<compile_context>
chip_gen: v7x
topology: tpu7x:2x2x1
jax: 0.10.0
libtpu: 0.0.40
codegen_flags: <defaults>
</compile_context>

<pallas_src>
import functools
import math

import jax
import jax.numpy as jnp
from jax import lax
from jax.experimental import pallas as pl
from jax.experimental.pallas import tpu as pltpu

IN_FEATURES = 3
OUT_FEATURES = 8
DEFAULT_MIN = 1.0   # module defaults: min = 1
DEFAULT_MAX = 1.0   # module defaults: max = 1

PACK = 16                        # batch rows per packed row
K_PACK = PACK * IN_FEATURES      # 48  input lanes per packed row
N_PACK = PACK * OUT_FEATURES     # 128 output lanes per packed row (lane-dense)

TILE_R_MAX = 4096                # packed rows / grid step = 65536 batch rows


def _round_up(n, m):
    return ((n + m - 1) // m) * m


def _linear_clamp_kernel(x_ref, w_ref, b_ref, o_ref, *, clamp_min, clamp_max):
    # x_ref: (tile_r, 48)  -- 16 batch rows x 3 features per packed row
    # w_ref: (48, 128)     -- kron(I_16, W^T); constant index_map -> fetched once
    # b_ref: (1, 128)      -- bias tiled 16x; fetched once
    # o_ref: (tile_r, 128) -- 16 batch rows x 8 outputs per packed row
    x = x_ref[...].astype(jnp.float32)            # f32 accumulate even for bf16 in
    y = lax.dot_general(
        x, w_ref[...],
        dimension_numbers=(((1,), (0,)), ((), ())),
        preferred_element_type=jnp.float32,
    )                                             # (tile_r, 128) on the MXU
    y = y + b_ref[...]
    y = jnp.maximum(y, clamp_min)                 # torch.clamp_min
    y = jnp.minimum(y, clamp_max)                 # torch.clamp_max
    o_ref[...] = y.astype(o_ref.dtype)


@functools.partial(jax.jit, static_argnames=("clamp_min", "clamp_max"))
def _linear_clamp_2d(x, weight, bias, clamp_min, clamp_max):
    B = x.shape[0]
    out_dtype = x.dtype

    # Pad B to a multiple of 16 only when needed (free reshape otherwise).
    b16 = _round_up(B, PACK)
    xp = x if b16 == B else jnp.pad(x, ((0, b16 - B), (0, 0)))
    R = b16 // PACK
    xp = xp.reshape(R, K_PACK)                    # free, contiguous reshape

    # Block-diagonal weight (48, 128): 16 copies of W^T on the diagonal, and a
    # 128-wide tiled bias.  Tiny constants, built in f32 for f32 accumulation.
    wf = weight.astype(jnp.float32)
    w_block = jnp.kron(jnp.eye(PACK, dtype=jnp.float32), wf.T)        # (48, 128)
    bias_tiled = jnp.tile(bias.astype(jnp.float32), PACK).reshape(1, N_PACK)

    # Tile selection: big tiles for large B; >=2 grid steps for mid-size B so
    # the "parallel" axis can be split across v7x's two TensorCores.
    if R <= 8:
        tile_r = R                                 # single (possibly tiny) block
    elif R <= 2 * TILE_R_MAX:
        tile_r = min(TILE_R_MAX, _round_up(pl.cdiv(R, 2), 8))
    else:
        tile_r = TILE_R_MAX

    kernel = functools.partial(
        _linear_clamp_kernel, clamp_min=clamp_min, clamp_max=clamp_max
    )

    yp = pl.pallas_call(
        kernel,
        out_shape=jax.ShapeDtypeStruct((R, N_PACK), out_dtype),
        grid=(pl.cdiv(R, tile_r),),                # ragged final block handled by Pallas
        in_specs=[
            pl.BlockSpec((tile_r, K_PACK), lambda i: (i, 0)),   # packed x, streamed
            pl.BlockSpec((K_PACK, N_PACK), lambda i: (0, 0)),   # weight, fetched once
            pl.BlockSpec((1, N_PACK), lambda i: (0, 0)),        # bias, fetched once
        ],
        out_specs=pl.BlockSpec((tile_r, N_PACK), lambda i: (i, 0)),
        compiler_params=pltpu.CompilerParams(
            dimension_semantics=("parallel",),     # megacore sharding on v7x
        ),
    )(xp, w_block, bias_tiled)

    y = yp.reshape(b16, OUT_FEATURES)              # free reshape back to native layout
    if b16 != B:
        y = y[:B]
    return y


def linear_clamp(x, weight, bias, clamp_min=DEFAULT_MIN, clamp_max=DEFAULT_MAX):
    """x: (..., 3), weight: (8, 3) (PyTorch layout), bias: (8,) -> (..., 8)."""
    lead = x.shape[:-1]
    x2 = x.reshape(-1, IN_FEATURES)
    if x2.shape[0] == 0:
        return jnp.zeros(lead + (OUT_FEATURES,), dtype=x.dtype)
    y2 = _linear_clamp_2d(x2, weight, bias, float(clamp_min), float(clamp_max))
    return y2.reshape(lead + (OUT_FEATURES,))


if __name__ == "__main__":
    key = jax.random.PRNGKey(0)
    kx, kw, kb, kx2 = jax.random.split(key, 4)

    # Deterministic parameters mimicking nn.Linear(3, 8) init shapes.
    bound = 1.0 / math.sqrt(IN_FEATURES)
    weight = jax.random.uniform(
        kw, (OUT_FEATURES, IN_FEATURES), jnp.float32, -bound, bound
    )
    bias = jax.random.uniform(kb, (OUT_FEATURES,), jnp.float32, -bound, bound)

    def reference(xv, mn, mx):
        # Exact elementwise-f32 reference (independent of matmul precision).
        v = (xv[:, None, :] * weight[None, :, :]).sum(-1) + bias
        return jnp.minimum(jnp.maximum(v, mn), mx)

    # Small batch, NOT a multiple of 16 -> exercises the pad + ragged-grid path.
    B = 37
    x = jax.random.normal(kx, (B, IN_FEATURES), jnp.float32)

    # 1) Module-default semantics (min = max = 1 -> output is exactly 1.0).
    out = jax.block_until_ready(linear_clamp(x, weight, bias))
    assert out.shape == (B, OUT_FEATURES)
    assert jnp.allclose(out, reference(x, DEFAULT_MIN, DEFAULT_MAX), atol=1e-6), \
        "mismatch vs reference (default bounds)"

    # 2) Bounds that exercise the matmul + bias path.  Tolerance is generous to
    #    cover MXU f32 emulation pass-count differences across TPU generations.
    out2 = jax.block_until_ready(linear_clamp(x, weight, bias, -0.5, 0.5))
    assert jnp.allclose(out2, reference(x, -0.5, 0.5), atol=2e-3, rtol=2e-3), \
        "mismatch vs reference (exercised bounds)"

    # 3) Multiple-of-16 batch (zero-copy path) with a multi-step grid (grid=2).
    B2 = 512
    x2 = jax.random.normal(kx2, (B2, IN_FEATURES), jnp.float32)
    out3 = jax.block_until_ready(linear_clamp(x2, weight, bias, -0.5, 0.5))
    assert out3.shape == (B2, OUT_FEATURES)
    assert jnp.allclose(out3, reference(x2, -0.5, 0.5), atol=2e-3, rtol=2e-3), \
        "mismatch vs reference (multi-step grid)"

    print("KERNEL_OK")
</pallas_src>

<mosaic_0001>
module attributes {stable_mosaic.version = 11 : i64} {
  func.func @_linear_clamp_kernel(%arg0: i32, %arg1: memref<3x48xf32, #tpu.memory_space<vmem>>, %arg2: memref<48x128xf32, #tpu.memory_space<vmem>>, %arg3: memref<1x128xf32, #tpu.memory_space<vmem>>, %arg4: memref<3x128xf32, #tpu.memory_space<vmem>>) attributes {dimension_semantics = [#tpu.dimension_semantics<parallel>], iteration_bounds = array<i64: 1>, scalar_prefetch = 0 : i64, scratch_operands = 0 : i64, tpu.core_type = #tpu.core_type<tc>, window_params = [{transform_indices = @transform_0, window_bounds = array<i64: 3, 48>}, {pipeline_mode = #tpu.pipeline_mode<synchronous>, transform_indices = @transform_1, window_bounds = array<i64: 48, 128>}, {pipeline_mode = #tpu.pipeline_mode<synchronous>, transform_indices = @transform_2, window_bounds = array<i64: 1, 128>}, {transform_indices = @transform_3, window_bounds = array<i64: 3, 128>}]} {
    %c0 = arith.constant 0 : index
    %c0_0 = arith.constant 0 : index
    %0 = vector.load %arg1[%c0, %c0_0] : memref<3x48xf32, #tpu.memory_space<vmem>>, vector<3x48xf32>
    %c0_1 = arith.constant 0 : index
    %c0_2 = arith.constant 0 : index
    %1 = vector.load %arg2[%c0_1, %c0_2] : memref<48x128xf32, #tpu.memory_space<vmem>>, vector<48x128xf32>
    %cst = arith.constant dense<0.000000e+00> : vector<3x128xf32>
    %2 = tpu.matmul %0, %1, %cst {dimension_numbers = #tpu.dot_dimension_numbers<[1], [0], [0], [1], [0, 0, 1, 1], [], []>} : vector<3x48xf32>, vector<48x128xf32>, vector<3x128xf32> -> vector<3x128xf32>
    %c0_3 = arith.constant 0 : index
    %c0_4 = arith.constant 0 : index
    %3 = vector.load %arg3[%c0_3, %c0_4] : memref<1x128xf32, #tpu.memory_space<vmem>>, vector<1x128xf32>
    %4 = vector.broadcast %3 : vector<1x128xf32> to vector<3x128xf32>
    %5 = arith.addf %2, %4 : vector<3x128xf32>
    %cst_5 = arith.constant 1.000000e+00 : f32
    %6 = vector.broadcast %cst_5 : f32 to vector<3x128xf32>
    %7 = arith.maximumf %5, %6 : vector<3x128xf32>
    %cst_6 = arith.constant 1.000000e+00 : f32
    %8 = vector.broadcast %cst_6 : f32 to vector<3x128xf32>
    %9 = arith.minimumf %7, %8 : vector<3x128xf32>
    %c0_7 = arith.constant 0 : index
    %c0_8 = arith.constant 0 : index
    %10 = vector.load %arg4[%c0_7, %c0_8] : memref<3x128xf32, #tpu.memory_space<vmem>>, vector<3x128xf32>
    tpu.vector_store %arg4[%c0_7, %c0_8], %9 {strides = array<i32>} : memref<3x128xf32, #tpu.memory_space<vmem>>, vector<3x128xf32>,
    return
  }
  func.func @transform_0(%arg0: i32) -> (i32, i32) {
    %c0_i32 = arith.constant 0 : i32
    %c0_i32_0 = arith.constant 0 : i32
    return %arg0, %c0_i32 : i32, i32
  }
  func.func @transform_1(%arg0: i32) -> (i32, i32) {
    %c0_i32 = arith.constant 0 : i32
    %c0_i32_0 = arith.constant 0 : i32
    %c0_i32_1 = arith.constant 0 : i32
    return %c0_i32, %c0_i32_0 : i32, i32
  }
  func.func @transform_2(%arg0: i32) -> (i32, i32) {
    %c0_i32 = arith.constant 0 : i32
    %c0_i32_0 = arith.constant 0 : i32
    %c0_i32_1 = arith.constant 0 : i32
    return %c0_i32, %c0_i32_0 : i32, i32
  }
  func.func @transform_3(%arg0: i32) -> (i32, i32) {
    %c0_i32 = arith.constant 0 : i32
    %c0_i32_0 = arith.constant 0 : i32
    return %arg0, %c0_i32 : i32, i32
  }
}

</mosaic_0001>

<bundles_post_ra>
// kernel: tile.8
= control target key start
LH: loop header
LB: loop body
LE: loop exit
PB: predicated region body
PF: predicated region fallthrough
CT: control target
= control target key end

     0   :  { %s28_s0 = inlined_call_operand.vmem [shape: f32[8], index: 0, kind: input, shape index: {}]   ;;  %s29_s1 = inlined_call_operand.vmem [shape: f32[16,8], index: 1, kind: output, shape index: {}]  }
   0x1   :  { %v4_v0 = vld [vmem:[%s28_s0] ss:$0 sm:$0xff] }
   0x2   :  { %5 = vst [vmem:[%s29_s1] sm:$0xff] %v4_v0  ;;  %8 = vst [vmem:[%s29_s1 + $0x8] sm:$0xff] %v4_v0 }

// kernel: tile.9
= control target key start
LH: loop header
LB: loop body
LE: loop exit
PB: predicated region body
PF: predicated region fallthrough
CT: control target
= control target key end

     0   :  { %s131_s10 = smov 120   ;;  %s132_s11 = smov 104   ;;  %vm3_vm0 = vcmask 64512   ;;  %vm9_vm1 = vcmask 1048512   ;;  %vm15_vm2 = vcmask 982912   ;;  %vm21_vm3 = vcmask 917312   ;;  %s207_s0 = inlined_call_operand.vmem [shape: f32[16,8], index: 0, kind: input, shape index: {}]   ;;  %s208_s1 = inlined_call_operand.vmem [shape: f32[1,128], index: 1, kind: output, shape index: {}]  }
   0x1   :  { %v101_v0 = vld [vmem:[%s207_s0 + $0xf] sm:$0x1]   ;;  %v103_v1 = vld [vmem:[%s207_s0 + $0xd] sm:$0x1]   ;;  %v102_v2 = vld [vmem:[%s207_s0 + $0xe] sm:$0x1]  }
   0x2   :  { %7 = vrot.lane.b32.xlu0 %v101_v0, %s131_s10  ;;  %19 = vrot.lane.b32.xlu1 %v103_v1, %s132_s11  ;;  %v104_v3 = vld [vmem:[%s207_s0 + $0xc] sm:$0x1]   ;;  %s133_s16 = smov 112   ;;  %s134_s17 = smov 96   ;;  %v105_v4 = vld [vmem:[%s207_s0 + $0xb] sm:$0x1]  }
   0x3   :  { %v106_v5 = vld [vmem:[%s207_s0 + $0xa] sm:$0x1]   ;;  %v2_v6 = vld [vmem:[%s207_s0] sm:$0x1]   ;;  %s135_s24 = smov 88   ;;  %s136_s25 = smov 80  }
   0x4   :  { %4 = vst.msk [vmem:[#allocation0] sm:$0x1] %vm3_vm0, %v2_v6   ;;  %v107_v7 = vld [vmem:[%s207_s0 + $0x9] sm:$0x1]   ;;  %v108_v8 = vld [vmem:[%s207_s0 + $0x8] sm:$0x1]  }
   0x5   :  { %s137_s30 = smov 72   ;;  %s138_s2 = smov 64   ;;  %v109_v9 = vld [vmem:[%s207_s0 + $0x7] sm:$0x1]   ;;  %v110_v10 = vld [vmem:[%s207_s0 + $0x6] sm:$0x1]  }
   0x6   :  { %13 = vrot.lane.b32.xlu0 %v102_v2, %s133_s16  ;;  %25 = vrot.lane.b32.xlu1 %v104_v3, %s134_s17  ;;  %s139_s7 = smov 56   ;;  %s140_s8 = smov 48   ;;  %v111_v11 = vld [vmem:[%s207_s0 + $0x5] sm:$0x1]   ;;  %v112_v12 = vld [vmem:[%s207_s0 + $0x4] sm:$0x1]  }
   0x7   :  { %s141_s13 = smov 40   ;;  %s142_s14 = smov 32   ;;  %v113_v13 = vld [vmem:[%s207_s0 + $0x3] sm:$0x1]   ;;  %v114_v14 = vld [vmem:[%s207_s0 + $0x2] sm:$0x1]  }
   0x8   :  { %s143_s19 = smov 24   ;;  %s144_s20 = smov 16   ;;  %v115_v15 = vld [vmem:[%s207_s0 + $0x1] sm:$0x1]   ;;  %vm27_vm4 = vcmask 851712   ;;  %vm33_vm5 = vcmask 786112  }
   0x9   :  { %s145_s0 = smov 8   ;;  %vm39_vm6 = vcmask 720512   ;;  %vm45_vm7 = vcmask 654912   ;;  %vm51_vm8 = vcmask 589312   ;;  %vm57_vm9 = vcmask 523712  }
   0xa   :  { %31 = vrot.lane.b32.xlu0 %v105_v4, %s135_s24  ;;  %37 = vrot.lane.b32.xlu1 %v106_v5, %s136_s25  ;;  %vm63_vm10 = vcmask 458112   ;;  %vm69_vm11 = vcmask 392512   ;;  %vm75_vm12 = vcmask 326912   ;;  %vm81_vm13 = vcmask 261312  }
   0xb   :  { %vm87_vm14 = vcmask 195712   ;;  %vm93_vm15 = vcmask 130112  }
   0xe   :  { %43 = vrot.lane.b32.xlu0 %v107_v7, %s137_s30  ;;  %49 = vrot.lane.b32.xlu1 %v108_v8, %s138_s2 }
  0x12   :  { %55 = vrot.lane.b32.xlu0 %v109_v9, %s139_s7  ;;  %61 = vrot.lane.b32.xlu1 %v110_v10, %s140_s8 }
  0x16   :  { %67 = vrot.lane.b32.xlu0 %v111_v11, %s141_s13  ;;  %73 = vrot.lane.b32.xlu1 %v112_v12, %s142_s14 }
  0x1a   :  { %79 = vrot.lane.b32.xlu0 %v113_v13, %s143_s19  ;;  %85 = vrot.lane.b32.xlu1 %v114_v14, %s144_s20 }
  0x1e   :  { %91 = vrot.lane.b32.xlu0 %v115_v15, %s145_s0 }
  0x74   :  { %v8_v16 = vpop.permute.xlu0 %7   ;;  %v20_v17 = vpop.permute.xlu1 %19  }
  0x75   :  { %10 = vst.msk [vmem:[#allocation0] sm:$0x1] %vm9_vm1, %v8_v16  }
  0x78   :  { %v14_v18 = vpop.permute.xlu0 %13   ;;  %v26_v19 = vpop.permute.xlu1 %25  }
  0x79   :  { %16 = vst.msk [vmem:[#allocation0] sm:$0x1] %vm15_vm2, %v14_v18  }
  0x7a   :  { %22 = vst.msk [vmem:[#allocation0] sm:$0x1] %vm21_vm3, %v20_v17  }
  0x7b   :  { %28 = vst.msk [vmem:[#allocation0] sm:$0x1] %vm27_vm4, %v26_v19  }
  0x7c   :  { %v32_v20 = vpop.permute.xlu0 %31   ;;  %v38_v21 = vpop.permute.xlu1 %37  }
  0x7d   :  { %34 = vst.msk [vmem:[#allocation0] sm:$0x1] %vm33_vm5, %v32_v20  }
  0x7e   :  { %40 = vst.msk [vmem:[#allocation0] sm:$0x1] %vm39_vm6, %v38_v21  }
  0x80   :  { %v44_v22 = vpop.permute.xlu0 %43   ;;  %v50_v23 = vpop.permute.xlu1 %49  }
  0x81   :  { %46 = vst.msk [vmem:[#allocation0] sm:$0x1] %vm45_vm7, %v44_v22  }
  0x82   :  { %52 = vst.msk [vmem:[#allocation0] sm:$0x1] %vm51_vm8, %v50_v23  }
  0x84   :  { %v56_v24 = vpop.permute.xlu0 %55   ;;  %v62_v25 = vpop.permute.xlu1 %61  }
  0x85   :  { %58 = vst.msk [vmem:[#allocation0] sm:$0x1] %vm57_vm9, %v56_v24  }
  0x86   :  { %64 = vst.msk [vmem:[#allocation0] sm:$0x1] %vm63_vm10, %v62_v25  }
  0x88   :  { %v68_v26 = vpop.permute.xlu0 %67   ;;  %v74_v27 = vpop.permute.xlu1 %73  }
  0x89   :  { %70 = vst.msk [vmem:[#allocation0] sm:$0x1] %vm69_vm11, %v68_v26  }
  0x8a   :  { %76 = vst.msk [vmem:[#allocation0] sm:$0x1] %vm75_vm12, %v74_v27  }
  0x8c   :  { %v80_v28 = vpop.permute.xlu0 %79   ;;  %v86_v29 = vpop.permute.xlu1 %85  }
  0x8d   :  { %82 = vst.msk [vmem:[#allocation0] sm:$0x1] %vm81_vm13, %v80_v28  }
  0x8e   :  { %88 = vst.msk [vmem:[#allocation0] sm:$0x1] %vm87_vm14, %v86_v29  }
  0x90   :  { %v92_v30 = vpop.permute.xlu0 %91  }
  0x91   :  { %94 = vst.msk [vmem:[#allocation0] sm:$0x1] %vm93_vm15, %v92_v30  }
  0x98   :  { %v98_v31 = vld [vmem:[#allocation0] sm:$0x1] }
  0x99   :  { %100 = vst [vmem:[%s208_s1] sm:$0x1] %v98_v31 }

// kernel: _linear_clamp_2d.1
= control target key start
LH: loop header
LB: loop body
LE: loop exit
PB: predicated region body
PF: predicated region fallthrough
CT: control target
= control target key end

     0   :  { %v145_v0 = vmov 0.0|0.0   ;;  %vm146_vm0 = vmmov 0   ;;  %v147_v4 = vmov 0.0   ;;  %vm28_vm1 = vcmask 392192   ;;  %s195_s1 = inlined_call_operand.vmem [shape: f32[48,128], index: 1, kind: input, shape index: {}]   ;;  %s196_s0 = inlined_call_operand.vmem [shape: f32[3,48], index: 0, kind: input, shape index: {}]   ;;  %s197_s2 = inlined_call_operand.vmem [shape: f32[1,128], index: 2, kind: input, shape index: {}]   ;;  %s198_s3 = inlined_call_operand.vmem [shape: f32[3,128], index: 3, kind: output, shape index: {}]  }
   0x1   :  { %133 = vmatprep.subr.bf16.mxu0 %v145_v0  ;;  %v15_v1 = vld [vmem:[%s195_s1] sm:$0xff]  ;;  %v16_v2 = vld [vmem:[%s195_s1 + $0x8] sm:$0xff]  ;;  %v17_v3 = vld [vmem:[%s195_s1 + $0x10] sm:$0xff]  ;;  %130 = vmatprep.mubr.msk.f32.mxu0 %vm146_vm0, %v147_v4 }
   0x2   :  { %v134_v5 = vpack.c.bf16 %v16_v2, %v15_v1  ;;  %v18_v6 = vld [vmem:[%s195_s1 + $0x18] sm:$0xff]  ;;  %v19_v8 = vld [vmem:[%s195_s1 + $0x20] sm:$0xff]  ;;  %v20_v9 = vld [vmem:[%s195_s1 + $0x28] sm:$0xff] }
   0x3   :  { %v137_v7 = vpack.c.bf16 %v18_v6, %v17_v3  ;;  %v140_v10 = vpack.c.bf16 %v20_v9, %v19_v8  ;;  %v14_v11 = vld [vmem:[%s196_s0] sm:$0x7] }
   0x4   :  { %135 = vmatpush3.bf16.msra.mxu0 %v134_v5  ;;  %v109_v12 = vld [vmem:[%s197_s2] ss:$0 sm:$0xff] }
   0x5   :  { %136 = vmatprep.subr.bf16.mxu0 %v145_v0 }
   0x8   :  { %138 = vmatpush3.bf16.msra.mxu0 %v137_v7 }
   0x9   :  { %139 = vmatprep.subr.bf16.mxu0 %v145_v0 }
   0xc   :  { %141 = vmatpush3.bf16.msra.mxu0 %v140_v10 }
   0xf   :  { %131 = vmatmul.mubr.msk.f32.vlgmr.msra.gmra.mrb[0].mxu0 %vm28_vm1, %v14_v11 }
  0xe2   :  { %v98_v13 = vpop.f32.mrb[0].mxu0 }
  0xe3   :  { %v99_v14 = vadd.f32 %v109_v12, %v98_v13  ;;  %v132_v15 = vpop.f32.mrb[1].mxu0 }
  0xe5   :  { %v102_v16 = vmax.f32 %v99_v14, 1.0 }
  0xe7   :  { %v103_v17 = vmin.f32 %v102_v16, 1.0 }
  0xe9   :  { %104 = vst [vmem:[%s198_s3] sm:$0x7] %v103_v17 }

</bundles_post_ra>
